<compile_context>
chip_gen: v5e
topology: v5e:2x2
jax: 0.10.0
libtpu: 0.0.40
codegen_flags: <defaults>
</compile_context>

<pallas_src>
import functools

import jax
import jax.numpy as jnp
from jax.experimental import pallas as pl
from jax.experimental.pallas import tpu as pltpu

LANE = 128  # hidden width is padded to one lane tile (stays on-chip only)


def _round_up(n, m):
    return ((n + m - 1) // m) * m


def _pad_to(a, shape):
    pads = [(0, s - d) for d, s in zip(a.shape, shape)]
    return jnp.pad(a, pads)


def _batch_semantics():
    """CORE_PARALLEL on v7x (2 TensorCores/chip); plain 'parallel' elsewhere."""
    try:
        kind = jax.devices()[0].device_kind.lower()
    except Exception:  # pragma: no cover - defensive
        kind = ""
    if "v7" in kind or "tpu7" in kind:
        return (pltpu.CORE_PARALLEL,)
    return ("parallel",)


def mlp_kernel(x_ref, w1_ref, b1_ref, w2_ref, b2_ref, w3_ref, b3_ref, o_ref):
    # One batch tile per grid step; weights/biases are VMEM-resident blocks.
    x = x_ref[...]                                               # (tile_b, 10)
    h1 = jnp.dot(x, w1_ref[...],
                 preferred_element_type=jnp.float32) + b1_ref[...]
    h1 = jnp.maximum(h1, 0.0)                                    # f32 ReLU (VPU)
    h2 = jnp.dot(h1.astype(w2_ref.dtype), w2_ref[...],
                 preferred_element_type=jnp.float32) + b2_ref[...]
    h2 = jnp.maximum(h2, 0.0)                                    # f32 ReLU (VPU)
    o_ref[...] = (
        jnp.dot(h2.astype(w3_ref.dtype), w3_ref[...],
                preferred_element_type=jnp.float32)
        + b3_ref[...]
    ).astype(o_ref.dtype)                                        # (tile_b, 5)


def prepare_params(params, mxu_dtype=jnp.bfloat16):
    """Pad / cast the Linear parameters ONCE (call outside the hot loop)."""
    w1, b1, w2, b2, w3, b3 = params
    in_dim = w1.shape[0]                       # 10
    out_dim = w3.shape[1]                      # 5
    w1_p = _pad_to(w1, (in_dim, LANE)).astype(mxu_dtype)        # (10, 128)
    w2_p = _pad_to(w2, (LANE, LANE)).astype(mxu_dtype)          # (128, 128)
    w3_p = _pad_to(w3, (LANE, out_dim)).astype(mxu_dtype)       # (128, 5)
    b1_p = _pad_to(b1.reshape(1, -1), (1, LANE)).astype(jnp.float32)
    b2_p = _pad_to(b2.reshape(1, -1), (1, LANE)).astype(jnp.float32)
    b3_p = b3.reshape(1, -1).astype(jnp.float32)                # (1, 5)
    return (w1_p, b1_p, w2_p, b2_p, w3_p, b3_p)


def mlp_forward(x, prepared, *, tile_b=2048):
    """x: (batch, 10) f32.  prepared: output of prepare_params()."""
    w1_p, b1_p, w2_p, b2_p, w3_p, b3_p = prepared
    batch, in_dim = x.shape
    out_dim = w3_p.shape[1]

    # Keep tiny batches tiny (single grid step) but never below a safe bf16
    # sublane tile; larger batches keep the caller's tile.
    tile_b = max(16, min(tile_b, _round_up(batch, 16)))
    padded_batch = _round_up(batch, tile_b)
    grid = (pl.cdiv(padded_batch, tile_b),)

    x_p = x
    if padded_batch != batch:
        x_p = jnp.pad(x, ((0, padded_batch - batch), (0, 0)))
    x_p = x_p.astype(w1_p.dtype)               # MXU operand dtype (bf16/f32)

    # Narrow streaming specs (full-array last dims); weights/biases resident.
    x_spec = pl.BlockSpec((tile_b, in_dim), lambda i: (i, 0))
    out_spec = pl.BlockSpec((tile_b, out_dim), lambda i: (i, 0))

    def resident(arr):
        return pl.BlockSpec(arr.shape, lambda i: (0, 0))

    out = pl.pallas_call(
        mlp_kernel,
        out_shape=jax.ShapeDtypeStruct((padded_batch, out_dim), jnp.float32),
        grid=grid,
        in_specs=[
            x_spec,
            resident(w1_p), resident(b1_p),
            resident(w2_p), resident(b2_p),
            resident(w3_p), resident(b3_p),
        ],
        out_specs=out_spec,
        compiler_params=pltpu.CompilerParams(
            dimension_semantics=_batch_semantics(),
        ),
    )(x_p, w1_p, b1_p, w2_p, b2_p, w3_p, b3_p)

    return out[:batch]


mlp_forward_jit = jax.jit(mlp_forward, static_argnames=("tile_b",))


def init_linear(key, fan_in, fan_out):
    # Mimic PyTorch nn.Linear default init: U(-1/sqrt(fan_in), 1/sqrt(fan_in)).
    kw, kb = jax.random.split(key)
    bound = 1.0 / jnp.sqrt(fan_in)
    w = jax.random.uniform(kw, (fan_in, fan_out), jnp.float32, -bound, bound)
    b = jax.random.uniform(kb, (1, fan_out), jnp.float32, -bound, bound)
    return w, b


def reference_forward(x, params):
    w1, b1, w2, b2, w3, b3 = params
    h1 = jnp.maximum(x @ w1 + b1, 0.0)
    h2 = jnp.maximum(h1 @ w2 + b2, 0.0)
    return h2 @ w3 + b3


if __name__ == "__main__":
    key = jax.random.PRNGKey(0)
    k_x, k1, k2, k3 = jax.random.split(key, 4)

    batch = 2
    x = jax.random.normal(k_x, (batch, 10), jnp.float32)

    w1, b1 = init_linear(k1, 10, 5)
    w2, b2 = init_linear(k2, 5, 5)
    w3, b3 = init_linear(k3, 5, 5)
    params = (w1, b1, w2, b2, w3, b3)
    ref = reference_forward(x, params)

    # 1) f32 MXU-operand path: bit-tight vs the pure-JAX reference.
    p_f32 = prepare_params(params, mxu_dtype=jnp.float32)
    out = jax.block_until_ready(mlp_forward_jit(x, p_f32))
    assert out.shape == (batch, 5)
    assert jnp.allclose(out, ref, atol=1e-5, rtol=1e-5), "f32 mismatch"

    # 2) default bf16 MXU-operand path (performance default): loose tolerance.
    p_bf16 = prepare_params(params)  # bfloat16 operands, f32 accumulation
    out_bf = jax.block_until_ready(mlp_forward_jit(x, p_bf16))
    assert out_bf.shape == (batch, 5)
    assert jnp.allclose(out_bf, ref, atol=5e-2, rtol=5e-2), "bf16 mismatch"

    # 3) multi-grid-step streamed path (batch not a multiple of tile_b).
    big_batch = 1537
    xb = jax.random.normal(k_x, (big_batch, 10), jnp.float32)
    ref_big = reference_forward(xb, params)
    out_big = jax.block_until_ready(mlp_forward_jit(xb, p_f32, tile_b=512))
    assert out_big.shape == (big_batch, 5)
    assert jnp.allclose(out_big, ref_big, atol=1e-4, rtol=1e-4), "big-batch mismatch"

    print("KERNEL_OK")
</pallas_src>

<mosaic_0001>
module attributes {stable_mosaic.version = 11 : i64} {
  func.func @mlp_kernel(%arg0: i32, %arg1: memref<16x10xf32, #tpu.memory_space<vmem>>, %arg2: memref<10x128xf32, #tpu.memory_space<vmem>>, %arg3: memref<1x128xf32, #tpu.memory_space<vmem>>, %arg4: memref<128x128xf32, #tpu.memory_space<vmem>>, %arg5: memref<1x128xf32, #tpu.memory_space<vmem>>, %arg6: memref<128x5xf32, #tpu.memory_space<vmem>>, %arg7: memref<1x5xf32, #tpu.memory_space<vmem>>, %arg8: memref<16x5xf32, #tpu.memory_space<vmem>>) attributes {dimension_semantics = [#tpu.dimension_semantics<parallel>], iteration_bounds = array<i64: 1>, scalar_prefetch = 0 : i64, scratch_operands = 0 : i64, tpu.core_type = #tpu.core_type<tc>, window_params = [{transform_indices = @transform_0, window_bounds = array<i64: 16, 10>}, {pipeline_mode = #tpu.pipeline_mode<synchronous>, transform_indices = @transform_1, window_bounds = array<i64: 10, 128>}, {pipeline_mode = #tpu.pipeline_mode<synchronous>, transform_indices = @transform_2, window_bounds = array<i64: 1, 128>}, {pipeline_mode = #tpu.pipeline_mode<synchronous>, transform_indices = @transform_3, window_bounds = array<i64: 128, 128>}, {pipeline_mode = #tpu.pipeline_mode<synchronous>, transform_indices = @transform_4, window_bounds = array<i64: 1, 128>}, {pipeline_mode = #tpu.pipeline_mode<synchronous>, transform_indices = @transform_5, window_bounds = array<i64: 128, 5>}, {pipeline_mode = #tpu.pipeline_mode<synchronous>, transform_indices = @transform_6, window_bounds = array<i64: 1, 5>}, {transform_indices = @transform_7, window_bounds = array<i64: 16, 5>}]} {
    %c0 = arith.constant 0 : index
    %c0_0 = arith.constant 0 : index
    %0 = vector.load %arg1[%c0, %c0_0] : memref<16x10xf32, #tpu.memory_space<vmem>>, vector<16x10xf32>
    %c0_1 = arith.constant 0 : index
    %c0_2 = arith.constant 0 : index
    %1 = vector.load %arg2[%c0_1, %c0_2] : memref<10x128xf32, #tpu.memory_space<vmem>>, vector<10x128xf32>
    %cst = arith.constant dense<0.000000e+00> : vector<16x128xf32>
    %2 = tpu.matmul %0, %1, %cst {dimension_numbers = #tpu.dot_dimension_numbers<[1], [0], [0], [1], [0, 0, 1, 1], [], []>} : vector<16x10xf32>, vector<10x128xf32>, vector<16x128xf32> -> vector<16x128xf32>
    %c0_3 = arith.constant 0 : index
    %c0_4 = arith.constant 0 : index
    %3 = vector.load %arg3[%c0_3, %c0_4] : memref<1x128xf32, #tpu.memory_space<vmem>>, vector<1x128xf32>
    %4 = vector.broadcast %3 : vector<1x128xf32> to vector<16x128xf32>
    %5 = arith.addf %2, %4 : vector<16x128xf32>
    %cst_5 = arith.constant 0.000000e+00 : f32
    %6 = vector.broadcast %cst_5 : f32 to vector<16x128xf32>
    %7 = arith.maximumf %5, %6 : vector<16x128xf32>
    %c0_6 = arith.constant 0 : index
    %c0_7 = arith.constant 0 : index
    %8 = vector.load %arg4[%c0_6, %c0_7] : memref<128x128xf32, #tpu.memory_space<vmem>>, vector<128x128xf32>
    %cst_8 = arith.constant dense<0.000000e+00> : vector<16x128xf32>
    %9 = tpu.matmul %7, %8, %cst_8 {dimension_numbers = #tpu.dot_dimension_numbers<[1], [0], [0], [1], [0, 0, 1, 1], [], []>} : vector<16x128xf32>, vector<128x128xf32>, vector<16x128xf32> -> vector<16x128xf32>
    %c0_9 = arith.constant 0 : index
    %c0_10 = arith.constant 0 : index
    %10 = vector.load %arg5[%c0_9, %c0_10] : memref<1x128xf32, #tpu.memory_space<vmem>>, vector<1x128xf32>
    %11 = vector.broadcast %10 : vector<1x128xf32> to vector<16x128xf32>
    %12 = arith.addf %9, %11 : vector<16x128xf32>
    %cst_11 = arith.constant 0.000000e+00 : f32
    %13 = vector.broadcast %cst_11 : f32 to vector<16x128xf32>
    %14 = arith.maximumf %12, %13 : vector<16x128xf32>
    %c0_12 = arith.constant 0 : index
    %c0_13 = arith.constant 0 : index
    %15 = vector.load %arg6[%c0_12, %c0_13] : memref<128x5xf32, #tpu.memory_space<vmem>>, vector<128x5xf32>
    %cst_14 = arith.constant dense<0.000000e+00> : vector<16x5xf32>
    %16 = tpu.matmul %14, %15, %cst_14 {dimension_numbers = #tpu.dot_dimension_numbers<[1], [0], [0], [1], [0, 0, 1, 1], [], []>} : vector<16x128xf32>, vector<128x5xf32>, vector<16x5xf32> -> vector<16x5xf32>
    %c0_15 = arith.constant 0 : index
    %c0_16 = arith.constant 0 : index
    %17 = vector.load %arg7[%c0_15, %c0_16] : memref<1x5xf32, #tpu.memory_space<vmem>>, vector<1x5xf32>
    %18 = vector.broadcast %17 : vector<1x5xf32> to vector<16x5xf32>
    %19 = arith.addf %16, %18 : vector<16x5xf32>
    %c0_17 = arith.constant 0 : index
    %c0_18 = arith.constant 0 : index
    %20 = vector.load %arg8[%c0_17, %c0_18] : memref<16x5xf32, #tpu.memory_space<vmem>>, vector<16x5xf32>
    tpu.vector_store %arg8[%c0_17, %c0_18], %19 {strides = array<i32>} : memref<16x5xf32, #tpu.memory_space<vmem>>, vector<16x5xf32>,
    return
  }
  func.func @transform_0(%arg0: i32) -> (i32, i32) {
    %c0_i32 = arith.constant 0 : i32
    %c0_i32_0 = arith.constant 0 : i32
    return %arg0, %c0_i32 : i32, i32
  }
  func.func @transform_1(%arg0: i32) -> (i32, i32) {
    %c0_i32 = arith.constant 0 : i32
    %c0_i32_0 = arith.constant 0 : i32
    %c0_i32_1 = arith.constant 0 : i32
    return %c0_i32, %c0_i32_0 : i32, i32
  }
  func.func @transform_2(%arg0: i32) -> (i32, i32) {
    %c0_i32 = arith.constant 0 : i32
    %c0_i32_0 = arith.constant 0 : i32
    %c0_i32_1 = arith.constant 0 : i32
    return %c0_i32, %c0_i32_0 : i32, i32
  }
  func.func @transform_3(%arg0: i32) -> (i32, i32) {
    %c0_i32 = arith.constant 0 : i32
    %c0_i32_0 = arith.constant 0 : i32
    %c0_i32_1 = arith.constant 0 : i32
    return %c0_i32, %c0_i32_0 : i32, i32
  }
  func.func @transform_4(%arg0: i32) -> (i32, i32) {
    %c0_i32 = arith.constant 0 : i32
    %c0_i32_0 = arith.constant 0 : i32
    %c0_i32_1 = arith.constant 0 : i32
    return %c0_i32, %c0_i32_0 : i32, i32
  }
  func.func @transform_5(%arg0: i32) -> (i32, i32) {
    %c0_i32 = arith.constant 0 : i32
    %c0_i32_0 = arith.constant 0 : i32
    %c0_i32_1 = arith.constant 0 : i32
    return %c0_i32, %c0_i32_0 : i32, i32
  }
  func.func @transform_6(%arg0: i32) -> (i32, i32) {
    %c0_i32 = arith.constant 0 : i32
    %c0_i32_0 = arith.constant 0 : i32
    %c0_i32_1 = arith.constant 0 : i32
    return %c0_i32, %c0_i32_0 : i32, i32
  }
  func.func @transform_7(%arg0: i32) -> (i32, i32) {
    %c0_i32 = arith.constant 0 : i32
    %c0_i32_0 = arith.constant 0 : i32
    return %arg0, %c0_i32 : i32, i32
  }
}

</mosaic_0001>

<bundles_post_ra>
// kernel: mlp_forward.1
= control target key start
LH: loop header
LB: loop body
LE: loop exit
PB: predicated region body
PF: predicated region fallthrough
CT: control target
= control target key end

     0   :  { %vm41_vm0 = vcmask 1041408   ;;  %vm34_vm1 = vcmask 80896   ;;  %vm158_vm2 = vcmask 39936   ;;  %s368_s1 = inlined_call_operand.vmem [shape: f32[10,128], index: 1, kind: input, shape index: {}]   ;;  %s369_s0 = inlined_call_operand.vmem [shape: f32[16,10], index: 0, kind: input, shape index: {}]   ;;  %s370_s3 = inlined_call_operand.vmem [shape: f32[128,128], index: 3, kind: input, shape index: {}]   ;;  %s371_s2 = inlined_call_operand.vmem [shape: f32[1,128], index: 2, kind: input, shape index: {}]   ;;  %s372_s4 = inlined_call_operand.vmem [shape: f32[1,128], index: 4, kind: input, shape index: {}]   ;;  %s373_s5 = inlined_call_operand.vmem [shape: f32[128,5], index: 5, kind: input, shape index: {}]   ;;  %s374_s6 = inlined_call_operand.vmem [shape: f32[1,5], index: 6, kind: input, shape index: {}]   ;;  %s375_s7 = inlined_call_operand.vmem [shape: f32[16,5], index: 7, kind: output, shape index: {}]  }
   0x1   :  { %v29_v0 = vld [vmem:[%s368_s1 + $0x8] sm:$0x3]  ;;  %v28_v1 = vld [vmem:[%s368_s1] sm:$0xff]  ;;  %v85_v3 = vld [vmem:[%s370_s3 + $0x78] sm:$0xff] }
   0x2   :  { %165 = vmatpush.msk.msra.mxu0 %vm41_vm0, %v29_v0  ;;  %v26_v2 = vld [vmem:[%s369_s0] sm:$0xff]  ;;  %v84_v4 = vld [vmem:[%s370_s3 + $0x70] sm:$0xff]  ;;  %90 = vmatpush.msra.mxu1 %v85_v3  ;;  %v83_v5 = vld [vmem:[%s370_s3 + $0x68] sm:$0xff] }
   0x3   :  { %168 = vmatpush.msra.mxu3 %v85_v3  ;;  %v82_v6 = vld [vmem:[%s370_s3 + $0x60] sm:$0xff]  ;;  %v81_v7 = vld [vmem:[%s370_s3 + $0x58] sm:$0xff]  ;;  %v27_v8 = vld [vmem:[%s369_s0 + $0x8] sm:$0xff] }
   0x4   :  { %60 = vmatpush.msra.mxu0 %v28_v1  ;;  %91 = vmatpush.msra.mxu1 %v84_v4  ;;  %v80_v9 = vld [vmem:[%s370_s3 + $0x50] sm:$0xff]  ;;  %v79_v10 = vld [vmem:[%s370_s3 + $0x48] sm:$0xff]  ;;  %v78_v11 = vld [vmem:[%s370_s3 + $0x40] sm:$0xff] }
   0x5   :  { %166 = vmatmul.msk.f32.vlgmr.msra.gmra.mxu0 %vm34_vm1, %v26_v2  ;;  %169 = vmatpush.msra.mxu3 %v84_v4  ;;  %v77_v12 = vld [vmem:[%s370_s3 + $0x38] sm:$0xff]  ;;  %v76_v13 = vld [vmem:[%s370_s3 + $0x30] sm:$0xff]  ;;  %v75_v14 = vld [vmem:[%s370_s3 + $0x28] sm:$0xff] }
   0x6   :  { %92 = vmatpush.msra.mxu1 %v83_v5  ;;  %v74_v15 = vld [vmem:[%s370_s3 + $0x20] sm:$0xff]  ;;  %v73_v16 = vld [vmem:[%s370_s3 + $0x18] sm:$0xff]  ;;  %v72_v17 = vld [vmem:[%s370_s3 + $0x10] sm:$0xff] }
   0x7   :  { %170 = vmatpush.msra.mxu3 %v83_v5  ;;  %v71_v18 = vld [vmem:[%s370_s3 + $0x8] sm:$0xff]  ;;  %v70_v19 = vld [vmem:[%s370_s3] sm:$0xff]  ;;  %v130_v20 = vld [vmem:[%s373_s5 + $0x78] sm:$0xff] }
   0x8   :  { %93 = vmatpush.msra.mxu1 %v82_v6  ;;  %v129_v21 = vld [vmem:[%s373_s5 + $0x70] sm:$0xff]  ;;  %135 = vmatpush.msrb.mxu0 %v130_v20  ;;  %v128_v22 = vld [vmem:[%s373_s5 + $0x68] sm:$0xff]  ;;  %v127_v23 = vld [vmem:[%s373_s5 + $0x60] sm:$0xff] }
   0x9   :  { %171 = vmatpush.msra.mxu3 %v82_v6  ;;  %184 = vmatpush.msra.mxu2 %v130_v20  ;;  %v126_v24 = vld [vmem:[%s373_s5 + $0x58] sm:$0xff]  ;;  %v125_v25 = vld [vmem:[%s373_s5 + $0x50] sm:$0xff]  ;;  %v124_v26 = vld [vmem:[%s373_s5 + $0x48] sm:$0xff] }
   0xa   :  { %94 = vmatpush.msra.mxu1 %v81_v7  ;;  %136 = vmatpush.msrb.mxu0 %v129_v21  ;;  %v123_v27 = vld [vmem:[%s373_s5 + $0x40] sm:$0xff]  ;;  %v122_v28 = vld [vmem:[%s373_s5 + $0x38] sm:$0xff]  ;;  %v121_v30 = vld [vmem:[%s373_s5 + $0x30] sm:$0xff] }
   0xb   :  { %172 = vmatpush.msra.mxu3 %v81_v7  ;;  %185 = vmatpush.msra.mxu2 %v129_v21  ;;  %v200_v29 = vld [vmem:[%s371_s2] ss:$0 sm:$0xff]  ;;  %v120_v31 = vld [vmem:[%s373_s5 + $0x28] sm:$0xff]  ;;  %v118_v36 = vld [vmem:[%s373_s5 + $0x18] sm:$0xff] }
   0xc   :  { %95 = vmatpush.msra.mxu1 %v80_v9  ;;  %137 = vmatpush.msrb.mxu0 %v128_v22  ;;  %v119_v34 = vld [vmem:[%s373_s5 + $0x20] sm:$0xff]  ;;  %v117_v40 = vld [vmem:[%s373_s5 + $0x10] sm:$0xff]  ;;  %v116_v41 = vld [vmem:[%s373_s5 + $0x8] sm:$0xff] }
   0xd   :  { %167 = vmatmul.msk.f32.gmra.mxu0 %vm34_vm1, %v27_v8  ;;  %173 = vmatpush.msra.mxu3 %v80_v9  ;;  %v115_v42 = vld [vmem:[%s373_s5] sm:$0xff] }
   0xe   :  { %96 = vmatpush.msra.mxu1 %v79_v10  ;;  %186 = vmatpush.msra.mxu2 %v128_v22  ;;  %v201_v43 = vld [vmem:[%s372_s4] ss:$0 sm:$0xff] }
   0xf   :  { %174 = vmatpush.msra.mxu3 %v79_v10  ;;  %138 = vmatpush.msrb.mxu0 %v127_v23  ;;  %v202_v50 = vld [vmem:[%s374_s6] ss:$0 sm:$0xff] }
  0x10   :  { %97 = vmatpush.msra.mxu1 %v78_v11  ;;  %187 = vmatpush.msra.mxu2 %v127_v23 }
  0x11   :  { %175 = vmatpush.msra.mxu3 %v78_v11  ;;  %139 = vmatpush.msrb.mxu0 %v126_v24 }
  0x12   :  { %98 = vmatpush.msra.mxu1 %v77_v12  ;;  %188 = vmatpush.msra.mxu2 %v126_v24 }
  0x13   :  { %176 = vmatpush.msra.mxu3 %v77_v12  ;;  %140 = vmatpush.msrb.mxu0 %v125_v25 }
  0x14   :  { %99 = vmatpush.msra.mxu1 %v76_v13  ;;  %189 = vmatpush.msra.mxu2 %v125_v25 }
  0x15   :  { %177 = vmatpush.msra.mxu3 %v76_v13  ;;  %141 = vmatpush.msrb.mxu0 %v124_v26 }
  0x16   :  { %100 = vmatpush.msra.mxu1 %v75_v14  ;;  %190 = vmatpush.msra.mxu2 %v124_v26 }
  0x17   :  { %178 = vmatpush.msra.mxu3 %v75_v14  ;;  %142 = vmatpush.msrb.mxu0 %v123_v27 }
  0x18   :  { %101 = vmatpush.msra.mxu1 %v74_v15  ;;  %191 = vmatpush.msra.mxu2 %v123_v27 }
  0x19   :  { %179 = vmatpush.msra.mxu3 %v74_v15  ;;  %143 = vmatpush.msrb.mxu0 %v122_v28 }
  0x1a   :  { %102 = vmatpush.msra.mxu1 %v73_v16  ;;  %192 = vmatpush.msra.mxu2 %v122_v28 }
  0x1b   :  { %180 = vmatpush.msra.mxu3 %v73_v16  ;;  %144 = vmatpush.msrb.mxu0 %v121_v30 }
  0x1c   :  { %103 = vmatpush.msra.mxu1 %v72_v17  ;;  %193 = vmatpush.msra.mxu2 %v121_v30 }
  0x1d   :  { %181 = vmatpush.msra.mxu3 %v72_v17  ;;  %145 = vmatpush.msrb.mxu0 %v120_v31 }
  0x1e   :  { %104 = vmatpush.msra.mxu1 %v71_v18  ;;  %194 = vmatpush.msra.mxu2 %v120_v31 }
  0x1f   :  { %182 = vmatpush.msra.mxu3 %v71_v18  ;;  %146 = vmatpush.msrb.mxu0 %v119_v34 }
  0x20   :  { %105 = vmatpush.msra.mxu1 %v70_v19  ;;  %195 = vmatpush.msra.mxu2 %v119_v34 }
  0x21   :  { %183 = vmatpush.msra.mxu3 %v70_v19  ;;  %147 = vmatpush.msrb.mxu0 %v118_v36 }
  0x22   :  { %196 = vmatpush.msra.mxu2 %v118_v36 }
  0x23   :  { %148 = vmatpush.msrb.mxu0 %v117_v40 }
  0x24   :  { %197 = vmatpush.msra.mxu2 %v117_v40 }
  0x25   :  { %149 = vmatpush.msrb.mxu0 %v116_v41 }
  0x26   :  { %198 = vmatpush.msra.mxu2 %v116_v41 }
  0x27   :  { %150 = vmatpush.msrb.mxu0 %v115_v42 }
  0x28   :  { %199 = vmatpush.msra.mxu2 %v115_v42 }
  0x82   :  { %v62_v32 = vpop.f32.mrf.mxu0 }
  0x83   :  { %v63_v33 = vadd.f32 %v200_v29, %v62_v32 }
  0x85   :  { %v68_v35 = vmax.f32 %v63_v33, 0.0 }
  0x87   :  { %106 = vmatmul.f32.vlgmr.msra.gmra.mxu1 %v68_v35 }
  0x8a   :  { %v65_v37 = vpop.f32.mrf.mxu0 }
  0x8b   :  { %v66_v38 = vadd.f32 %v200_v29, %v65_v37 }
  0x8d   :  { %v69_v39 = vmax.f32 %v66_v38, 0.0 }
  0x8f   :  { %109 = vmatmul.f32.vlgmr.msra.gmra.mxu3 %v69_v39 }
 0x104   :  { %v107_v44 = vpop.f32.mrf.mxu1 }
 0x105   :  { %v108_v45 = vadd.f32 %v201_v43, %v107_v44 }
 0x107   :  { %v113_v46 = vmax.f32 %v108_v45, 0.0 }
 0x109   :  { %151 = vmatmul.f32.vlgmr.msrb.gmra.mxu0 %v113_v46 }
 0x112   :  { %v110_v47 = vpop.f32.mrf.mxu3 }
 0x113   :  { %v111_v48 = vadd.f32 %v201_v43, %v110_v47 }
 0x115   :  { %v114_v49 = vmax.f32 %v111_v48, 0.0 }
 0x117   :  { %154 = vmatmul.f32.vlgmr.msra.gmra.mxu2 %v114_v49 }
 0x186   :  { %v152_v51 = vpop.f32.mrf.mxu0 }
 0x187   :  { %v153_v52 = vadd.f32 %v202_v50, %v152_v51 }
 0x189   :  { %159 = vst.msk [vmem:[%s375_s7] sm:$0xff] %vm158_vm2, %v153_v52 }
 0x19a   :  { %v155_v53 = vpop.f32.mrf.mxu2 }
 0x19b   :  { %v156_v54 = vadd.f32 %v202_v50, %v155_v53 }
 0x19d   :  { %160 = vst.msk [vmem:[%s375_s7 + $0x8] sm:$0xff] %vm158_vm2, %v156_v54 }

</bundles_post_ra>
